<compile_context>
chip_gen: v6e
topology: v6e:2x2x1
jax: 0.10.0
libtpu: 0.0.40
codegen_flags: <defaults>
</compile_context>

<pallas_src>
import functools

import jax
import jax.numpy as jnp
from jax.experimental import pallas as pl
from jax.experimental.pallas import tpu as pltpu

_TARGET_GRID_STEPS = 8   # >= 4 steps per TensorCore on a 2-core (v7x) part.


def _vmem_budgets():
    """(per-block byte budget, vmem_limit_bytes) sized to this TPU generation."""
    vmem_cap = None
    try:
        vmem_cap = getattr(pltpu.get_tpu_info(), "vmem_capacity_bytes", None)
    except Exception:
        vmem_cap = None
    if vmem_cap is None:
        vmem_cap = 64 * 1024 * 1024            # conservative: v7x per-core VMEM
    if vmem_cap >= 128 * 1024 * 1024:          # v5e / v6e (128 MiB)
        return 14 * 1024 * 1024, 100 * 1024 * 1024
    return 7 * 1024 * 1024, 48 * 1024 * 1024   # v7x (64 MiB physical)


def _largest_divisor_leq(n, cap):
    cap = max(1, min(n, cap))
    for d in range(cap, 0, -1):
        if n % d == 0:
            return d
    return 1


# ---------------------------------------------------------------------------
# Main path: the whole (C, HW) slab of a batch element fits the block budget.
# ---------------------------------------------------------------------------
def _se_kernel(x_ref, w1t_ref, w2t_ref, o_ref, *, inv_hw):
    # x_ref / o_ref: (bt, C, HW); w1t_ref: (C, Cr); w2t_ref: (Cr, C)
    # Global average pool: lane-direction reduce over HW, f32 accumulation.
    mean = jnp.sum(x_ref[...].astype(jnp.float32), axis=2) * inv_hw        # (bt, C)
    # fc1 (1x1 conv, no bias) + ReLU.
    h = jnp.maximum(jnp.dot(mean, w1t_ref[...],
                            preferred_element_type=jnp.float32), 0.0)      # (bt, Cr)
    # fc2 (1x1 conv, no bias) + sigmoid.
    s = jax.nn.sigmoid(jnp.dot(h, w2t_ref[...],
                               preferred_element_type=jnp.float32))        # (bt, C)
    # Per-channel scale of the original input (lane broadcast over HW).
    # x_ref is re-read here so no full-block f32 copy stays live for bf16 I/O.
    o_ref[...] = (x_ref[...].astype(jnp.float32) * s[:, :, None]).astype(o_ref.dtype)


# ---------------------------------------------------------------------------
# Fallback path: a single batch slice exceeds the block budget -> tile C.
# ---------------------------------------------------------------------------
def _se_kernel_ctiled(x_ref, w1t_ref, w2_ref, o_ref, h_ref, *, inv_hw):
    # Grid: (B, 2 phases, C // ct)
    # x_ref/o_ref: (1, ct, HW); w1t_ref: (ct, Cr); w2_ref: (ct, Cr); h_ref: (1, Cr)
    p = pl.program_id(1)
    c = pl.program_id(2)

    @pl.when(p == 0)
    def _phase0():
        @pl.when(c == 0)
        def _init():
            h_ref[...] = jnp.zeros_like(h_ref)
        pooled = jnp.sum(x_ref[...].astype(jnp.float32), axis=2) * inv_hw   # (1, ct)
        # Accumulate this channel tile's contribution to the fc1 pre-activation.
        h_ref[...] += jnp.dot(pooled, w1t_ref[...],
                              preferred_element_type=jnp.float32)           # (1, Cr)

    @pl.when(p == 1)
    def _phase1():
        h = jnp.maximum(h_ref[...], 0.0)                                    # (1, Cr)
        # Slice of s for this channel tile: s_c = sigmoid(W2[c_tile, :] @ h).
        s = jax.nn.sigmoid(
            jnp.einsum("or,cr->oc", h, w2_ref[...],
                       preferred_element_type=jnp.float32))                 # (1, ct)
        o_ref[...] = (x_ref[...].astype(jnp.float32)
                      * s[:, :, None]).astype(o_ref.dtype)


def se_module(x_nchw, w1, w2, *, block_budget_bytes=None, vmem_limit_bytes=None):
    """SE forward. x_nchw: (B, C, H, W); w1: (Cr, C) fc1 weight; w2: (C, Cr) fc2 weight."""
    B, C, H, W = x_nchw.shape
    Cr = w1.shape[0]
    HW = H * W
    itemsize = jnp.dtype(x_nchw.dtype).itemsize

    auto_budget, auto_limit = _vmem_budgets()
    block_budget = auto_budget if block_budget_bytes is None else block_budget_bytes
    vmem_limit = auto_limit if vmem_limit_bytes is None else vmem_limit_bytes

    # Free reshape (no data movement): NCHW -> (B, C, HW).
    x = x_nchw.reshape(B, C, HW)
    bytes_per_batch = max(1, C * HW * itemsize)
    w_bytes = 2 * C * Cr * jnp.dtype(w1.dtype).itemsize
    inv_hw = 1.0 / float(HW)

    # ---- fallback: channel-tiled, two-phase path for oversized batch slices --
    ct = None
    if bytes_per_batch > block_budget:
        cands = [d for d in range(8, C, 8) if C % d == 0]        # sublane-aligned
        if cands:
            fitting = [d for d in cands if d * HW * itemsize <= block_budget]
            ct = max(fitting) if fitting else min(cands)

    if ct is not None:
        nc = C // ct
        kernel = functools.partial(_se_kernel_ctiled, inv_hw=inv_hw)
        cost = pl.CostEstimate(
            flops=int(4 * B * C * Cr + 3 * B * C * HW),
            transcendentals=int(B * C),
            bytes_accessed=int(3 * B * C * HW * itemsize + B * nc * w_bytes))
        out = pl.pallas_call(
            kernel,
            out_shape=jax.ShapeDtypeStruct((B, C, HW), x.dtype),
            grid_spec=pltpu.PrefetchScalarGridSpec(
                num_scalar_prefetch=0,
                grid=(B, 2, nc),
                in_specs=[
                    pl.BlockSpec((1, ct, HW), lambda b, p, c: (b, c, 0)),
                    pl.BlockSpec((ct, Cr), lambda b, p, c: (c, 0)),   # w1.T tiles
                    pl.BlockSpec((ct, Cr), lambda b, p, c: (c, 0)),   # w2 row tiles
                ],
                # During phase 0 the out index stays pinned at (b, 0, 0) so the
                # output buffer is only flushed once per tile, after phase 1
                # has written real data (exactly one write pass).
                out_specs=pl.BlockSpec((1, ct, HW), lambda b, p, c: (b, c * p, 0)),
                scratch_shapes=[pltpu.VMEM((1, Cr), jnp.float32)],
            ),
            compiler_params=pltpu.CompilerParams(
                dimension_semantics=("parallel", "arbitrary", "arbitrary"),
                vmem_limit_bytes=vmem_limit),
            cost_estimate=cost,
        )(x, w1.T, w2)
        return out.reshape(B, C, H, W)

    # ---- main path: one fused pass over (bt, C, HW) blocks -------------------
    # (If C has no multiple-of-8 divisor and the slab is oversized, we land
    #  here with bt=1 and rely on the explicit vmem_limit; extremely rare.)
    cap_budget = max(1, block_budget // bytes_per_batch)
    cap_steps = B // _TARGET_GRID_STEPS if B >= _TARGET_GRID_STEPS else 1
    bt = _largest_divisor_leq(B, min(cap_budget, max(1, cap_steps)))
    grid = (B // bt,)

    kernel = functools.partial(_se_kernel, inv_hw=inv_hw)
    cost = pl.CostEstimate(
        flops=int(4 * B * C * Cr + 2 * B * C * HW),
        transcendentals=int(B * C),
        bytes_accessed=int(2 * B * C * HW * itemsize + (B // bt) * w_bytes))
    out = pl.pallas_call(
        kernel,
        out_shape=jax.ShapeDtypeStruct((B, C, HW), x.dtype),
        grid_spec=pltpu.PrefetchScalarGridSpec(
            num_scalar_prefetch=0,
            grid=grid,
            in_specs=[
                pl.BlockSpec((bt, C, HW), lambda b: (b, 0, 0)),
                pl.BlockSpec((C, Cr), lambda b: (0, 0)),
                pl.BlockSpec((Cr, C), lambda b: (0, 0)),
            ],
            out_specs=pl.BlockSpec((bt, C, HW), lambda b: (b, 0, 0)),
        ),
        compiler_params=pltpu.CompilerParams(
            dimension_semantics=("parallel",),
            vmem_limit_bytes=vmem_limit),
        cost_estimate=cost,
    )(x, w1.T, w2.T)
    return out.reshape(B, C, H, W)


def _reference(x, w1, w2):
    # Pure-JAX reference of the PyTorch forward.
    mean = jnp.mean(x, axis=(2, 3))                     # (B, C)
    h = jnp.maximum(mean @ w1.T, 0.0)                   # (B, Cr)
    s = jax.nn.sigmoid(h @ w2.T)                        # (B, C)
    return x * s[:, :, None, None]


def _make_inputs(key, B, C, H, W, reduction):
    Cr = C // reduction
    kx, k1, k2 = jax.random.split(key, 3)
    x = jax.random.normal(kx, (B, C, H, W), dtype=jnp.float32)
    # fc1: Conv2d(C, Cr, 1, bias=False), xavier_uniform init.
    limit1 = (6.0 / (C + Cr)) ** 0.5
    w1 = jax.random.uniform(k1, (Cr, C), minval=-limit1, maxval=limit1,
                            dtype=jnp.float32)
    # fc2: Conv2d(Cr, C, 1, bias=False), default (kaiming-uniform-like) init.
    limit2 = (1.0 / Cr) ** 0.5
    w2 = jax.random.uniform(k2, (C, Cr), minval=-limit2, maxval=limit2,
                            dtype=jnp.float32)
    return x, w1, w2


if __name__ == "__main__":
    key = jax.random.PRNGKey(0)
    k1, k2, k3, k4 = jax.random.split(key, 4)

    # Case 1: lane-dense spatial axis (HW = 256), 8-step grid.
    x, w1, w2 = _make_inputs(k1, B=8, C=32, H=16, W=16, reduction=4)
    out = se_module(x, w1, w2)
    jax.block_until_ready(out)
    assert out.shape == x.shape
    assert jnp.allclose(out, _reference(x, w1, w2), atol=1e-5, rtol=1e-5)

    # Case 2: production-like SE shape (C=128, HW=49) -- no wrapper transposes.
    x, w1, w2 = _make_inputs(k2, B=4, C=128, H=7, W=7, reduction=8)
    out = se_module(x, w1, w2)
    jax.block_until_ready(out)
    assert out.shape == x.shape
    assert jnp.allclose(out, _reference(x, w1, w2), atol=1e-5, rtol=1e-5)

    # Case 3: bf16 activations (f32 accumulation inside the kernel).
    x, w1, w2 = _make_inputs(k3, B=8, C=64, H=16, W=8, reduction=4)
    xb = x.astype(jnp.bfloat16)
    out = se_module(xb, w1, w2)
    jax.block_until_ready(out)
    assert out.dtype == jnp.bfloat16
    ref = _reference(xb.astype(jnp.float32), w1, w2)
    assert jnp.allclose(out.astype(jnp.float32), ref, atol=5e-2, rtol=5e-2)

    # Case 4: exercise the channel-tiled fallback path via a tiny block budget.
    x, w1, w2 = _make_inputs(k4, B=2, C=64, H=8, W=8, reduction=4)
    out = se_module(x, w1, w2, block_budget_bytes=8 * 1024)
    jax.block_until_ready(out)
    assert out.shape == x.shape
    assert jnp.allclose(out, _reference(x, w1, w2), atol=1e-5, rtol=1e-5)

    print("KERNEL_OK")
</pallas_src>

<mosaic_0001>
module attributes {stable_mosaic.version = 11 : i64} {
  func.func @_se_kernel(%arg0: i32, %arg1: memref<1x32x256xf32, #tpu.memory_space<vmem>>, %arg2: memref<32x8xf32, #tpu.memory_space<vmem>>, %arg3: memref<8x32xf32, #tpu.memory_space<vmem>>, %arg4: memref<1x32x256xf32, #tpu.memory_space<vmem>>) attributes {dimension_semantics = [#tpu.dimension_semantics<parallel>], iteration_bounds = array<i64: 8>, scalar_prefetch = 0 : i64, scratch_operands = 0 : i64, tpu.core_type = #tpu.core_type<tc>, window_params = [{transform_indices = @transform_0, window_bounds = array<i64: 1, 32, 256>}, {pipeline_mode = #tpu.pipeline_mode<synchronous>, transform_indices = @transform_1, window_bounds = array<i64: 32, 8>}, {pipeline_mode = #tpu.pipeline_mode<synchronous>, transform_indices = @transform_2, window_bounds = array<i64: 8, 32>}, {transform_indices = @transform_3, window_bounds = array<i64: 1, 32, 256>}]} {
    %c0 = arith.constant 0 : index
    %c0_0 = arith.constant 0 : index
    %c0_1 = arith.constant 0 : index
    %0 = vector.load %arg1[%c0, %c0_0, %c0_1] : memref<1x32x256xf32, #tpu.memory_space<vmem>>, vector<1x32x256xf32>
    %cst = arith.constant dense<0.000000e+00> : vector<1x32xf32>
    %1 = vector.multi_reduction <add>, %0, %cst [2] : vector<1x32x256xf32> to vector<1x32xf32>
    %cst_2 = arith.constant 3.906250e-03 : f32
    %2 = vector.broadcast %cst_2 : f32 to vector<1x32xf32>
    %3 = arith.mulf %1, %2 : vector<1x32xf32>
    %c0_3 = arith.constant 0 : index
    %c0_4 = arith.constant 0 : index
    %4 = vector.load %arg2[%c0_3, %c0_4] : memref<32x8xf32, #tpu.memory_space<vmem>>, vector<32x8xf32>
    %cst_5 = arith.constant dense<0.000000e+00> : vector<1x8xf32>
    %5 = tpu.matmul %3, %4, %cst_5 {dimension_numbers = #tpu.dot_dimension_numbers<[1], [0], [0], [1], [0, 0, 1, 1], [], []>} : vector<1x32xf32>, vector<32x8xf32>, vector<1x8xf32> -> vector<1x8xf32>
    %cst_6 = arith.constant 0.000000e+00 : f32
    %6 = vector.broadcast %cst_6 : f32 to vector<1x8xf32>
    %7 = arith.maximumf %5, %6 : vector<1x8xf32>
    %c0_7 = arith.constant 0 : index
    %c0_8 = arith.constant 0 : index
    %8 = vector.load %arg3[%c0_7, %c0_8] : memref<8x32xf32, #tpu.memory_space<vmem>>, vector<8x32xf32>
    %cst_9 = arith.constant dense<0.000000e+00> : vector<1x32xf32>
    %9 = tpu.matmul %7, %8, %cst_9 {dimension_numbers = #tpu.dot_dimension_numbers<[1], [0], [0], [1], [0, 0, 1, 1], [], []>} : vector<1x8xf32>, vector<8x32xf32>, vector<1x32xf32> -> vector<1x32xf32>
    %10 = arith.negf %9 : vector<1x32xf32>
    %11 = math.exp %10 : vector<1x32xf32>
    %cst_10 = arith.constant 1.000000e+00 : f32
    %12 = vector.broadcast %cst_10 : f32 to vector<1x32xf32>
    %13 = arith.addf %12, %11 : vector<1x32xf32>
    %14 = arith.divf %12, %13 : vector<1x32xf32>
    %c0_11 = arith.constant 0 : index
    %c0_12 = arith.constant 0 : index
    %c0_13 = arith.constant 0 : index
    %15 = vector.load %arg1[%c0_11, %c0_12, %c0_13] : memref<1x32x256xf32, #tpu.memory_space<vmem>>, vector<1x32x256xf32>
    %16 = vector.shape_cast %14 : vector<1x32xf32> to vector<1x32x1xf32>
    %17 = vector.broadcast %16 : vector<1x32x1xf32> to vector<1x32x256xf32>
    %18 = arith.mulf %15, %17 : vector<1x32x256xf32>
    %c0_14 = arith.constant 0 : index
    %c0_15 = arith.constant 0 : index
    %c0_16 = arith.constant 0 : index
    %19 = vector.load %arg4[%c0_14, %c0_15, %c0_16] : memref<1x32x256xf32, #tpu.memory_space<vmem>>, vector<1x32x256xf32>
    tpu.vector_store %arg4[%c0_14, %c0_15, %c0_16], %18 {strides = array<i32>} : memref<1x32x256xf32, #tpu.memory_space<vmem>>, vector<1x32x256xf32>,
    return
  }
  func.func @transform_0(%arg0: i32) -> (i32, i32, i32) {
    %c0_i32 = arith.constant 0 : i32
    %c0_i32_0 = arith.constant 0 : i32
    %c0_i32_1 = arith.constant 0 : i32
    return %arg0, %c0_i32, %c0_i32_0 : i32, i32, i32
  }
  func.func @transform_1(%arg0: i32) -> (i32, i32) {
    %c0_i32 = arith.constant 0 : i32
    %c0_i32_0 = arith.constant 0 : i32
    %c0_i32_1 = arith.constant 0 : i32
    return %c0_i32, %c0_i32_0 : i32, i32
  }
  func.func @transform_2(%arg0: i32) -> (i32, i32) {
    %c0_i32 = arith.constant 0 : i32
    %c0_i32_0 = arith.constant 0 : i32
    %c0_i32_1 = arith.constant 0 : i32
    return %c0_i32, %c0_i32_0 : i32, i32
  }
  func.func @transform_3(%arg0: i32) -> (i32, i32, i32) {
    %c0_i32 = arith.constant 0 : i32
    %c0_i32_0 = arith.constant 0 : i32
    %c0_i32_1 = arith.constant 0 : i32
    return %arg0, %c0_i32, %c0_i32_0 : i32, i32, i32
  }
}

</mosaic_0001>

<bundles_post_ra>
// kernel: tpu_custom_call.1
= control target key start
LH: loop header
LB: loop body
LE: loop exit
PB: predicated region body
PF: predicated region fallthrough
CT: control target
= control target key end

     0   :  { %8 = vsyncpa [#allocation3], 0  ;;  %s948_s0 = inlined_call_operand.hbm [shape: f32[8,32,256], index: 0, kind: input, shape index: {}]   ;;  %s949_s1 = inlined_call_operand.vmem [shape: f32[32,8], index: 1, kind: input, shape index: {}]   ;;  %s950_s2 = inlined_call_operand.vmem [shape: f32[8,32], index: 2, kind: input, shape index: {}]   ;;  %s951_s3 = inlined_call_operand.hbm [shape: f32[8,32,256], index: 3, kind: output, shape index: {}]  }
   0x1   :  { %10 = vsyncpa [#allocation3 + $0x1], 0 }
   0x2   :  { %11 = vsyncpa [#allocation4], 0 }
   0x3   :  { %13 = vsyncpa [#allocation4 + $0x1], 0  ;;  %s745_s12 = smov 0   ;;  %s747_s13 = smov 0  }
   0x4   :  { %s749_s14 = smov 0   ;;  %s751_s15 = smov 0  }
   0x5 LB: > { %s766_s16 = sadd.s32 4294967295, %s715_s15   ;;  %s525_s17 = sadd.s32 4294967294, %s715_s15   ;;  %s715_s15 = sphi %s751_s15, %s965_s15   ;;  %s711_s14 = sphi %s749_s14, %s964_s14   ;;  %s707_s13 = sphi %s747_s13, %s963_s13   ;;  %s703_s12 = sphi %s745_s12, %s962_s12  }
   0x6   : > { %s770_s18 = sadd.s32 1, %s715_s15   ;;  %s26_s19 = sadd.s32 1, %s711_s14 }
   0x7   : > { %s23_s20 = ssub.s32 %s715_s15, %s770_s18  ;;  %p33_p0 = scmp.ne.s32.totalorder %s711_s14, %s707_s13 }
   0x8   : > { %p24_p1 = scmp.eq.s32.totalorder %s23_s20, 0  ;;  %p34_p2 = scmp.eq.s32.totalorder %s715_s15, 0 }
   0x9   : > { %p39_p3 = scmp.ne.s32.totalorder %s707_s13, %s703_s12  ;;  %p40_p4 = scmp.eq.s32.totalorder %s766_s16, 0 }
   0xa   : > { %s782_s21 = scalar_select %p24_p1, %s711_s14, %s26_s19  }
   0xb   : > { %p784_p5 = por %p34_p2, %p33_p0  ;;  %p788_p6 = por %p40_p4, %p39_p3 }
   0xc   : > { %p105_p7 = scmp.eq.s32.totalorder %s766_s16, 7  ;;  %p111_p8 = scmp.eq.s32.totalorder %s525_s17, 7 }
   0xd   : > { %s955_s23 = scalar_select %p788_p6, 1, 0 }
   0xe   : > { %p579_p9 = scmp.lt.s32.totalorder %s715_s15, 8  ;;  %p794_p10 = por %p105_p7, %p33_p0 }
   0xf   : > { %p798_p11 = por %p111_p8, %p39_p3  ;;  %s137_s26 = sand.u32 1, %s711_s14  }
  0x10   : > { %s956_s24 = scalar_select %p794_p10, 1, 0 }
  0x11   : > { %s957_s25 = scalar_select %p798_p11, 1, 0 }
  0x12   : > { %s542_s27 = sshll.u32 %s715_s15, 10  ;;  %s528_s28 = sshll.u32 %s137_s26, 6 }
  0x13   : > { %s807_s4 = scalar_lea.hbm %s948_s0, %s542_s27  ;;  %s141_s5 = scalar_lea.vmem [#allocation2], %s528_s28 }
  0x14   : > { %s148_s6 = sshll.u32 %s141_s5, 4  ;;  %p811_p12 = pnand %p579_p9, %p784_p5  ;;  %s815_s6 = int_to_ptr.vmem [resolvable:$true] %s148_s6 }
  0x15   : > { %s817_s8 = scalar_lea.sflag [#allocation3], %s137_s26  ;;  %s623_s9 = scalar_lea.hbm %s807_s4, 1024 }
  0x16   : > { %p624_p13 = scmp.ne.s32.totalorder %s807_s4, %s623_s9  ;;  %p625_p0 = pneg %p811_p12 }
  0x17   : > { %s628_s17 = scalar_lea.hbm %s948_s0, 8192  ;;  %p629_p3 = scmp.lt.s32.totalorder %s807_s4, %s948_s0 }
  0x18   : > { %p626_p1 = pnand %p625_p0, %p624_p13  ;;  %p630_p4 = scmp.lt.s32.totalorder %s628_s17, %s623_s9 }
  0x1a   : > { %p627_p2 = pneg %p626_p1  ;;  %p631_p5 = por %p630_p4, %p629_p3 }
  0x1c   : > { %p632_p7 = pnand %p631_p5, %p627_p2 }
  0x1e   : > { %635 = shalt.err (!%p632_p7)
}
  0x1f   : > { %s636_s22 = scalar_lea.vmem %s815_s6, 1024  ;;  %s717_s26 = smov [#allocation2]  }
  0x20   : > { %p637_p8 = scmp.ne.s32.totalorder %s815_s6, %s636_s22  ;;  %s641_s27 = sshll.u32 %s717_s26, 4  ;;  %s642_s27 = int_to_ptr.vmem [resolvable:$false] %s641_s27 }
  0x21   : > { %s643_s28 = scalar_lea.vmem %s642_s27, 2048  ;;  %p644_p1 = scmp.lt.s32.totalorder %s815_s6, %s642_s27 }
  0x22   : > { %p639_p9 = pnand %p637_p8, %p625_p0  ;;  %p645_p11 = scmp.lt.s32.totalorder %s643_s28, %s636_s22 }
  0x24   : > { %p640_p13 = pneg %p639_p9  ;;  %p646_p10 = por %p645_p11, %p644_p1 }
  0x26   : > { %p647_p6 = pnand %p646_p10, %p640_p13 }
  0x28   : > { %650 = shalt.err (!%p647_p6)
}
  0x29   : > { %s718_s29 = smov 256   ;;  %s719_s30 = smov 16  }
  0x2a   : > { %574 = dma.hbm_to_vmem [thread:$0]  (!%p811_p12), %s807_s4, 1024, %s815_s6, %s817_s8, %s718_s29, %s718_s29, %s719_s30  }
  0x2b   : > { %p531_p0 = scmp.ge.s32.totalorder %s715_s15, 1  ;;  %p156_p2 = scmp.lt.s32.totalorder %s715_s15, 9 }
  0x2d   : > { %p157_p3 = pnand %p531_p0, %p156_p2 }
  0x2e   : > { %s841_s5 = sand.u32 (!%p157_p3), 1, %s707_s13   ;;  %p959_p6 = scmp.ne.s32.totalorder (!%p157_p3), %s955_s23, 0 }
  0x2f   : > { %160 = sbr.rel (%p157_p3) target bundleno = 766 (0x2fe), region = 32  ;;  %s532_s9 = sshll.u32 (!%p157_p3), %s841_s5, 6 }
  0x30   : > { %s163_s10 = scalar_lea.sflag (!%p157_p3), [#allocation3], %s841_s5  ;;  %s166_s11 = scalar_lea.vmem (!%p157_p3), [#allocation2], %s532_s9 }
  0x34   : > { %694 = dma.done.wait (%p959_p6), %s163_s10, 1024  }
  0x35   : > { %696 = vsyncadd (%p959_p6), %s163_s10, 4294966272  ;;  %v851_v0 = vld [vmem:[%s166_s11] sm:$0xff]  ;;  %v853_v1 = vld [vmem:[%s166_s11 + $0x8] sm:$0xff]  ;;  %v720_v12 = vmov 0.0   ;;  %vm721_vm0 = vmmov 0   ;;  %v221_v17 = vlaneseq  ;;  %vm232_vm1 = vcmask 130112  }
  0x36   : > { %v855_v2 = vld [vmem:[%s166_s11 + $0x20] sm:$0xff]  ;;  %v197_v3 = vadd.f32 %v853_v1, %v851_v0  ;;  %v859_v4 = vld [vmem:[%s166_s11 + $0x28] sm:$0xff]  ;;  %v861_v5 = vld [vmem:[%s166_s11 + $0x10] sm:$0xff]  ;;  %551 = vmatprep.subr.mxu0 %v720_v12  ;;  %562 = vmatprep.subr.mxu1 %v720_v12  ;;  %vm239_vm2 = vcmask 195712   ;;  %vm246_vm3 = vcmask 261312   ;;  %vm248_vm4 = vcmask 261120  }
  0x37   : > { %v863_v6 = vld [vmem:[%s166_s11 + $0x18] sm:$0xff]  ;;  %v203_v7 = vadd.f32 %v859_v4, %v855_v2  ;;  %v867_v8 = vld [vmem:[%s166_s11 + $0x30] sm:$0xff]  ;;  %v214_v15 = vld [vmem:[%s949_s1 + $0x8] sm:$0xff]  ;;  %559 = vmatprep.mubr.msk.f32.mxu0 %vm721_vm0, %v720_v12  ;;  %564 = vmatprep.mubr.msk.f32.mxu1 %vm721_vm0, %v720_v12  ;;  %v222_v18 = vand.u32 127, %v221_v17  ;;  %v224_v19 = vshrl.u32 %v221_v17, 7  ;;  %vm323_vm5 = vcmask 64512  }
  0x38   : > { %v869_v9 = vld [vmem:[%s166_s11 + $0x38] sm:$0xff]  ;;  %198 = vadd.xlane.f32.xlu0 %v197_v3  ;;  %v200_v10 = vadd.f32 %v863_v6, %v861_v5  ;;  %v215_v14 = vld [vmem:[%s949_s1 + $0x10] sm:$0xff]  ;;  %v213_v16 = vld [vmem:[%s949_s1] sm:$0xff]  ;;  %s188_s27 = scalar_lea.vmem [#allocation5], %s532_s9  ;;  %s543_s29 = sshll.u32 %s766_s16, 10 }
  0x39   : > { %204 = vadd.xlane.f32.xlu1 %v203_v7  ;;  %v206_v11 = vadd.f32 %v869_v9, %v867_v8  ;;  %v216_v13 = vld [vmem:[%s949_s1 + $0x18] sm:$0xff]  ;;  %v227_v20 = vadd.s32 4294967288, %v222_v18  ;;  %v234_v22 = vadd.s32 4294967280, %v222_v18  ;;  %v241_v23 = vadd.s32 4294967272, %v222_v18  ;;  %v322_v42 = vld [vmem:[%s950_s2] sm:$0xff]  ;;  %s452_s28 = sshll.u32 %s188_s27, 4  ;;  %s904_s10 = scalar_lea.hbm %s951_s3, %s543_s29  ;;  %s899_s28 = int_to_ptr.vmem [resolvable:$true] %s452_s28 }
  0x3a   : > { %552 = vmatpush3.msra.mxu0 %v216_v13  ;;  %v225_v25 = vsub.s32 %v222_v18, %v224_v19  ;;  %563 = vmatpush3.msra.mxu1 %v322_v42  ;;  %v405_v51 = vsub.s32 0, %v224_v19  ;;  %s439_s16 = scalar_lea.sflag [#allocation4], %s841_s5  ;;  %s651_s11 = scalar_lea.vmem %s899_s28, 1024 }
  0x3b   : > { %553 = vmatprep.subr.mxu0 %v720_v12  ;;  %v230_v27 = vsub.s32 %v227_v20, %v224_v19  ;;  %v237_v28 = vsub.s32 %v234_v22, %v224_v19  ;;  %v244_v31 = vsub.s32 %v241_v23, %v224_v19  ;;  %p652_p10 = scmp.ne.s32.totalorder %s899_s28, %s651_s11  ;;  %p960_p11 = scmp.ne.s32.totalorder %s956_s24, 0 }
  0x3c   : > { %201 = vadd.xlane.f32.xlu0 %v200_v10  ;;  %554 = vmatpush3.msra.mxu0 %v215_v14  ;;  %s722_s23 = smov [#allocation5]  }
  0x3d   : > { %207 = vadd.xlane.f32.xlu1 %v206_v11  ;;  %555 = vmatprep.subr.mxu0 %v720_v12  ;;  %p653_p12 = pnand %p652_p10, %p960_p11  ;;  %s655_s4 = sshll.u32 %s722_s23, 4  ;;  %s656_s4 = int_to_ptr.vmem [resolvable:$false] %s655_s4 }
  0x3e   : > { %556 = vmatpush3.msra.mxu0 %v214_v15  ;;  %s657_s6 = scalar_lea.vmem %s656_s4, 2048  ;;  %p658_p5 = scmp.lt.s32.totalorder %s899_s28, %s656_s4 }
  0x3f   : > { %557 = vmatprep.subr.mxu0 %v720_v12  ;;  %p654_p4 = pneg %p653_p12  ;;  %p659_p7 = scmp.lt.s32.totalorder %s657_s6, %s651_s11 }
  0x40   : > { %558 = vmatpush3.msra.mxu0 %v213_v16 }
  0x41   : > { %p660_p8 = por %p659_p7, %p658_p5 }
  0x43   : > { %p661_p9 = pnand %p660_p8, %p654_p4 }
  0xc1   : > { %v199_v21 = vpop.xlane.xlu0 %198 }
  0xc2   : > { %v205_v24 = vpop.xlane.xlu1 %204  ;;  %v209_v26 = vmul.f32 0.00390625, %v199_v21 }
  0xc3   : > { %v211_v29 = vmul.f32 0.00390625, %v205_v24 }
  0xc4   : > { %v226_v35 = vrot.slane %v209_v26, %v225_v25 }
  0xc5   : > { %v202_v30 = vpop.xlane.xlu0 %201  ;;  %v238_v37 = vrot.slane %v211_v29, %v237_v28 }
  0xc6   : > { %v210_v32 = vmul.f32 0.00390625, %v202_v30  ;;  %v208_v33 = vpop.xlane.xlu1 %207 }
  0xc7   : > { %v212_v34 = vmul.f32 0.00390625, %v208_v33 }
  0xc8   : > { %v231_v36 = vrot.slane %v210_v32, %v230_v27 }
  0xc9   : > { %v245_v38 = vrot.slane %v212_v34, %v244_v31 }
  0xca   : > { %v233_v39 = vsel %vm232_vm1, %v231_v36, %v226_v35 }
  0xcb   : > { %v240_v40 = vsel %vm239_vm2, %v238_v37, %v233_v39 }
  0xcc   : > { %v247_v41 = vsel %vm246_vm3, %v245_v38, %v240_v40 }
  0xcd   : > { %560 = vmatmul.mubr.msk.f32.vlgmr.msra.gmra.mxu0 %vm248_vm4, %v247_v41 }
 0x18d   : > { %v317_v43 = vpop.f32.mrf.mxu0 }
 0x18e   : > { %v321_v44 = vmax.f32 %v317_v43, 0.0 }
 0x18f   : > { %v561_v45 = vpop.f32.mrf.mxu0 }
 0x190   : > { %565 = vmatmul.mubr.msk.f32.vlgmr.msra.gmra.mxu1 %vm323_vm5, %v321_v44 }
 0x250   : > { %v393_v46 = vpop.f32.mrf.mxu1 }
 0x251   : > { %v536_v47 = vmul.f32 -1.442695, %v393_v46 }
 0x252   : > { %v566_v48 = vpop.f32.mrf.mxu1 }
 0x253   : > { %619 = vpow2.f32 %v536_v47 }
 0x260   : > { %v620_v49 = vpop.eup %619 }
 0x261   : > { %v400_v50 = vadd.f32 1.0, %v620_v49 }
 0x263   : > { %621 = vrcp.f32 %v400_v50 }
 0x270   : > { %v622_v52 = vpop.eup %621 }
 0x271   : > { %v406_v53 = vrot.slane %v622_v52, %v405_v51 }
 0x273   : > { %412 = vbcast.lane.b32.xlu1 %v406_v53, 264  ;;  %408 = vbcast.lane.b32.xlu0 %v406_v53, 256 }
 0x277   : > { %416 = vbcast.lane.b32.xlu1 %v406_v53, 272 }
 0x27b   : > { %420 = vbcast.lane.b32.xlu1 %v406_v53, 280 }
 0x2e5   : > { %v413_v54 = vpop.permute.xlu1 %412  ;;  %v409_v55 = vpop.permute.xlu0 %408 }
 0x2e6   : > { %v424_v56 = vmul.f32 %v413_v54, %v861_v5  ;;  %v425_v57 = vmul.f32 %v413_v54, %v863_v6  ;;  %v422_v58 = vmul.f32 %v409_v55, %v851_v0  ;;  %v423_v59 = vmul.f32 %v409_v55, %v853_v1 }
 0x2e8   : > { %432 = vst [vmem:[%s188_s27 + $0x10] sm:$0xff] %v424_v56  ;;  %433 = vst [vmem:[%s188_s27 + $0x18] sm:$0xff] %v425_v57 }
 0x2e9   : > { %430 = vst [vmem:[%s188_s27] sm:$0xff] %v422_v58  ;;  %431 = vst [vmem:[%s188_s27 + $0x8] sm:$0xff] %v423_v59  ;;  %v417_v60 = vpop.permute.xlu1 %416 }
 0x2ea   : > { %v426_v61 = vmul.f32 %v417_v60, %v855_v2  ;;  %v427_v62 = vmul.f32 %v417_v60, %v859_v4 }
 0x2ec   : > { %434 = vst [vmem:[%s188_s27 + $0x20] sm:$0xff] %v426_v61  ;;  %435 = vst [vmem:[%s188_s27 + $0x28] sm:$0xff] %v427_v62 }
 0x2ed   : > { %v421_v63 = vpop.permute.xlu1 %420 }
 0x2ee   : > { %v428_v0 = vmul.f32 %v421_v63, %v867_v8  ;;  %v429_v1 = vmul.f32 %v421_v63, %v869_v9 }
 0x2f0   : > { %436 = vst [vmem:[%s188_s27 + $0x30] sm:$0xff] %v428_v0  ;;  %437 = vst [vmem:[%s188_s27 + $0x38] sm:$0xff] %v429_v1 }
 0x2f1   : > { %664 = shalt.err (!%p661_p9)
}
 0x2f2   : > { %s665_s7 = scalar_lea.hbm %s904_s10, 1024  ;;  %s669_s19 = scalar_lea.hbm %s951_s3, 8192 }
 0x2f3   : > { %p666_p13 = scmp.ne.s32.totalorder %s904_s10, %s665_s7  ;;  %p670_p2 = scmp.lt.s32.totalorder %s904_s10, %s951_s3 }
 0x2f4   : > { %p671_p3 = scmp.lt.s32.totalorder %s669_s19, %s665_s7 }
 0x2f5   : > { %p667_p1 = pnand %p666_p13, %p960_p11 }
 0x2f6   : > { %p672_p6 = por %p671_p3, %p670_p2 }
 0x2f7   : > { %p668_p0 = pneg %p667_p1 }
 0x2f9   : > { %p673_p10 = pnand %p672_p6, %p668_p0 }
 0x2fb   : > { %676 = shalt.err (!%p673_p10)
}
 0x2fc   : > { %s723_s26 = smov 256   ;;  %s724_s27 = smov 16  }
 0x2fd   : > { %569 = dma.vmem_to_hbm [thread:$0]  (%p960_p11), %s899_s28, 1024, %s904_s10, %s439_s16, %s723_s26, %s723_s26, %s724_s27  }
 0x2fe PF: > { %p580_p12 = scmp.ge.s32.totalorder %s715_s15, 2  ;;  %s467_s29 = sand.u32 1, %s703_s12  }
 0x2ff   : > { %p961_p4 = scmp.ne.s32.totalorder %s957_s25, 0  ;;  %s468_s30 = scalar_lea.sflag [#allocation4], %s467_s29 }
 0x301   : > { %p576_p5 = pnand %p580_p12, %p961_p4 }
 0x303   : > { %p577_p7 = pneg %p576_p5 }
 0x305   : > { %698 = dma.done.wait (%p577_p7), %s468_s30, 1024  }
 0x306   : > { %700 = vsyncadd (%p577_p7), %s468_s30, 4294966272  ;;  %p16_p8 = scmp.ge.s32.totalorder %s770_s18, 10   ;;  %s962_s12 = smov %s707_s13 }
 0x307   : > { %s963_s13 = smov %s711_s14  ;;  %s964_s14 = smov %s782_s21 }
 0x308   : > { %s965_s15 = smov %s770_s18  ;;  %18 = sbr.rel (!%p16_p8) target bundleno = 5 (0x5), region = 77 }
 0x30d   :  { %473 = vsyncpa [#allocation3], 1 }
 0x30e   :  { %475 = vsyncpa [#allocation3 + $0x1], 1 }
 0x30f   :  { %476 = vsyncpa [#allocation4], 1 }
 0x310   :  { %478 = vsyncpa [#allocation4 + $0x1], 1 }

</bundles_post_ra>
